<compile_context>
chip_gen: v6e
topology: v6e:2x2x1
jax: 0.10.0
libtpu: 0.0.40
codegen_flags: <defaults>
</compile_context>

<pallas_src>
import functools

import jax
import jax.numpy as jnp
from jax.experimental import pallas as pl
from jax.experimental.pallas import tpu as pltpu

_LANE = 128
_SUBLANE = 8
_CHUNK_ROWS = 1024  # inner-strip rows: bounds each f32 temporary to ~0.5 MiB


def _round_up(x, m):
    return (x + m - 1) // m * m


def _int_pow(v, g):
    """v**g for small non-negative integer g, as explicit VPU multiplies."""
    if g == 0:
        return jnp.ones_like(v)
    r = v
    for _ in range(g - 1):
        r = r * v
    return r


def _tpu_defaults():
    """Generation-aware (max block rows [f32 accounting], vmem limit, parallel slices)."""
    tile_rows = 16384                 # 8 MiB f32-equivalent per input block (v5e/v6e)
    vmem_limit = 64 * 1024 * 1024
    num_parallel = 1                  # single TensorCore on v5e/v6e
    try:
        kind = jax.devices()[0].device_kind.lower()
    except Exception:
        kind = ""
    if "v7" in kind or "7x" in kind:
        tile_rows = 8192              # 4 MiB per input: respect 64 MiB/TC VMEM on v7x
        vmem_limit = 40 * 1024 * 1024
        num_parallel = 2              # split leading grid axis across the 2 TCs
    return tile_rows, vmem_limit, num_parallel


def _focal_loss_kernel(logits_ref, labels_ref, out_ref, *,
                       gamma, gamma_int, alpha, total,
                       tile_rows, chunk_rows, num_k):
    p = pl.program_id(0)
    k = pl.program_id(1)

    @pl.when(k == 0)
    def _():
        out_ref[...] = jnp.zeros((_SUBLANE, _LANE), jnp.float32)

    # Logical first row of this block (from the *unclamped* grid position; the
    # index_map clamps the DMA, the mask below zeroes any out-of-range data).
    block_row0 = (p * num_k + k) * tile_rows

    # Hoisted loop-invariant iotas (JAX does not CSE broadcast_in_dim).
    row_iota = jax.lax.broadcasted_iota(jnp.int32, (chunk_rows, _LANE), 0)
    lane_iota = jax.lax.broadcasted_iota(jnp.int32, (chunk_rows, _LANE), 1)

    def chunk_body(c, acc):
        r0 = pl.multiple_of(c * chunk_rows, chunk_rows)
        x = logits_ref[pl.ds(r0, chunk_rows), :].astype(jnp.float32)
        y = labels_ref[pl.ds(r0, chunk_rows), :].astype(jnp.float32)

        # Numerically-stable sigmoid / log-sigmoid with 2 EUP transcendentals +
        # 1 approx EUP reciprocal per element:
        #   z       = exp(-|x|)
        #   log_pt  = log(sigmoid(x)) = min(x,0) - log1p(z)
        #   pt      = sigmoid(x)      = r        (x>=0), z*r (x<0),  r = 1/(1+z)
        #   log(1-pt) = log_pt - x
        z = jnp.exp(-jnp.abs(x))
        log_pt = jnp.minimum(x, 0.0) - jnp.log1p(z)
        r = pl.reciprocal(1.0 + z, approx=True)
        pt = jnp.where(x >= 0.0, r, z * r)
        one_m_pt = 1.0 - pt

        if gamma_int is not None:
            w_pos = _int_pow(one_m_pt, gamma_int)   # (1 - pt) ** gamma
            w_neg = _int_pow(pt, gamma_int)         # pt ** gamma
        else:
            w_pos = one_m_pt ** gamma
            w_neg = pt ** gamma

        # loss = -a*w_pos*y*log(pt) - (1-a)*w_neg*(1-y)*log(1-pt)
        # with log(1-pt) = log_pt - x, factored to save VALU multiplies:
        c_neg = (1.0 - alpha) * w_neg * (1.0 - y)
        loss = c_neg * x - (alpha * w_pos * y + c_neg) * log_pt

        # Mask 128-pad tail and partial-edge / clamped blocks via the global
        # element index (int32: assumes total < 2**31 elements).
        elem_idx = (block_row0 + r0 + row_iota) * _LANE + lane_iota
        loss = jnp.where(elem_idx < total, loss, 0.0)

        # Collapse row-tile groups only; keep a vreg-shaped (8,128) running sum.
        return acc + jnp.sum(loss.reshape(-1, _SUBLANE, _LANE), axis=0)

    n_chunks = tile_rows // chunk_rows
    psum = jax.lax.fori_loop(0, n_chunks, chunk_body,
                             jnp.zeros((_SUBLANE, _LANE), jnp.float32))

    # Accumulate straight into the resident output block (its index ignores k).
    out_ref[...] += psum


def focal_loss(logits, labels, *, gamma=2, alpha=0.5, size_average=True):
    """Pallas TPU focal loss; returns a scalar = mean(loss) over all elements.

    Matches FocalLoss.forward: `size_average` and `elipson` are unused there, so
    the result is always the mean. Accepts any shape; logits may be f32/bf16/int,
    labels may be float/int/bool (all casts happen in-kernel, compute is f32).
    """
    assert logits.shape == labels.shape
    total = int(logits.size)
    assert total > 0

    tile_rows_max, vmem_limit, num_parallel = _tpu_defaults()

    # Keep labels narrow; only normalize bool -> int8 for a safe memory layout.
    if labels.dtype == jnp.bool_:
        labels = labels.astype(jnp.int8)

    # Flatten to a lane-dense [rows, 128] view. When total % 128 == 0 this is a
    # free metadata reshape (no HBM copy).
    rows = pl.cdiv(total, _LANE)
    pad = rows * _LANE - total
    flat_logits = logits.reshape(-1)
    flat_labels = labels.reshape(-1)
    if pad:
        # TODO(synk): this copies both inputs; only hit when total % 128 != 0.
        # A 1D-block or manual-DMA path would avoid it entirely. The pad value is
        # irrelevant: padded elements are masked in-kernel by the element index.
        flat_logits = jnp.pad(flat_logits, (0, pad))
        flat_labels = jnp.pad(flat_labels, (0, pad))
    logits2d = flat_logits.reshape(rows, _LANE)
    labels2d = flat_labels.reshape(rows, _LANE)

    chunk_rows = min(_CHUNK_ROWS, _round_up(rows, 32))
    tile_rows = min(tile_rows_max, _round_up(rows, chunk_rows))
    assert tile_rows % chunk_rows == 0
    num_blocks = pl.cdiv(rows, tile_rows)
    num_k = pl.cdiv(num_blocks, num_parallel)

    gamma_f = float(gamma)
    gamma_i = int(gamma_f) if (gamma_f.is_integer() and 0 <= gamma_f <= 8) else None

    kernel = functools.partial(
        _focal_loss_kernel, gamma=gamma_f, gamma_int=gamma_i, alpha=float(alpha),
        total=total, tile_rows=tile_rows, chunk_rows=chunk_rows, num_k=num_k)

    def row_block(p, k):
        # Clamp so out-of-range (p, k) steps re-read the last valid block; their
        # contribution is zeroed by the in-kernel element-index mask.
        return (jnp.minimum(p * num_k + k, num_blocks - 1), 0)

    partials = pl.pallas_call(
        kernel,
        out_shape=jax.ShapeDtypeStruct((num_parallel * _SUBLANE, _LANE), jnp.float32),
        grid_spec=pltpu.PrefetchScalarGridSpec(
            num_scalar_prefetch=0,
            # leading axis: per-core split (v7x); trailing axis: reduction.
            grid=(num_parallel, num_k),
            in_specs=[
                pl.BlockSpec((tile_rows, _LANE), row_block),
                pl.BlockSpec((tile_rows, _LANE), row_block),
            ],
            out_specs=pl.BlockSpec((_SUBLANE, _LANE), lambda p, k: (p, 0)),
        ),
        compiler_params=pltpu.CompilerParams(
            # TODO(synk): on v7x verify the leading axis really shards across both
            # TensorCores; if codegen is unchanged, switch it to pltpu.CORE_PARALLEL.
            dimension_semantics=("parallel", "arbitrary"),
            vmem_limit_bytes=vmem_limit,
        ),
    )(logits2d, labels2d)

    # Tiny final reduction (num_parallel * 8 * 128 elements) in plain JAX.
    return jnp.sum(partials) * (1.0 / float(total))


def _focal_loss_ref(logits, labels, gamma=2, alpha=0.5):
    pt = jax.nn.sigmoid(logits)
    loss = (-alpha * (1 - pt) ** gamma * labels * jnp.log(pt)
            - (1 - alpha) * pt ** gamma * (1 - labels) * jnp.log(1 - pt))
    return jnp.mean(loss)


if __name__ == "__main__":
    key = jax.random.PRNGKey(0)
    k1, k2 = jax.random.split(key)
    # Small multi-label classification shape: batch=8, num_labels=48
    # (total = 384 = 3*128 -> exercises the copy-free lane-dense path and a
    #  partial (3-of-32-row) edge block with in-kernel masking).
    batch, num_labels = 8, 48
    logits = jax.random.normal(k1, (batch, num_labels), dtype=jnp.float32)
    labels = (jax.random.uniform(k2, (batch, num_labels)) > 0.5).astype(jnp.float32)

    loss_fn = jax.jit(focal_loss)

    out = jax.block_until_ready(loss_fn(logits, labels))
    ref = _focal_loss_ref(logits, labels, gamma=2, alpha=0.5)
    # Tolerance accounts for the approximate EUP reciprocal used for sigmoid.
    assert jnp.allclose(out, ref, rtol=5e-3, atol=1e-6), (out, ref)

    # Narrow-dtype path (bf16 logits, int8 labels) -- casts happen in-kernel.
    out2 = jax.block_until_ready(
        loss_fn(logits.astype(jnp.bfloat16), labels.astype(jnp.int8)))
    ref2 = _focal_loss_ref(logits.astype(jnp.bfloat16).astype(jnp.float32),
                           labels, gamma=2, alpha=0.5)
    assert jnp.allclose(out2, ref2, rtol=5e-3, atol=1e-6), (out2, ref2)

    print("KERNEL_OK")
</pallas_src>

<mosaic_0001>
module attributes {stable_mosaic.version = 11 : i64} {
  func.func @_focal_loss_kernel(%arg0: i32, %arg1: i32, %arg2: memref<32x128xf32, #tpu.memory_space<vmem>>, %arg3: memref<32x128xf32, #tpu.memory_space<vmem>>, %arg4: memref<8x128xf32, #tpu.memory_space<vmem>>) attributes {dimension_semantics = [#tpu.dimension_semantics<parallel>, #tpu.dimension_semantics<arbitrary>], iteration_bounds = array<i64: 1, 1>, scalar_prefetch = 0 : i64, scratch_operands = 0 : i64, tpu.core_type = #tpu.core_type<tc>, window_params = [{transform_indices = @transform_0, window_bounds = array<i64: 32, 128>}, {transform_indices = @transform_1, window_bounds = array<i64: 32, 128>}, {transform_indices = @transform_2, window_bounds = array<i64: 8, 128>}]} {
    %c0_i32 = arith.constant 0 : i32
    %0 = arith.cmpi eq, %arg1, %c0_i32 : i32
    %1 = arith.extui %0 : i1 to i32
    %c0_i32_0 = arith.constant 0 : i32
    %2 = arith.cmpi ne, %1, %c0_i32_0 : i32
    scf.if %2 {
      %cst_19 = arith.constant 0.000000e+00 : f32
      %62 = vector.broadcast %cst_19 : f32 to vector<8x128xf32>
      %c0_20 = arith.constant 0 : index
      %c0_21 = arith.constant 0 : index
      %63 = vector.load %arg4[%c0_20, %c0_21] : memref<8x128xf32, #tpu.memory_space<vmem>>, vector<8x128xf32>
      tpu.vector_store %arg4[%c0_20, %c0_21], %62 {strides = array<i32>} : memref<8x128xf32, #tpu.memory_space<vmem>>, vector<8x128xf32>,
    } else {
    }
    %c1_i32 = arith.constant 1 : i32
    %3 = arith.muli %arg0, %c1_i32 : i32
    %4 = arith.addi %3, %arg1 : i32
    %c32_i32 = arith.constant 32 : i32
    %5 = arith.muli %4, %c32_i32 : i32
    %6 = tpu.iota {dimensions = array<i32: 0>} : vector<32x128xi32>
    %7 = tpu.iota {dimensions = array<i32: 1>} : vector<32x128xi32>
    %cst = arith.constant 0.000000e+00 : f32
    %8 = vector.broadcast %cst : f32 to vector<8x128xf32>
    %c0_i32_1 = arith.constant 0 : i32
    %c32_i32_2 = arith.constant 32 : i32
    %9 = arith.muli %c0_i32_1, %c32_i32_2 : i32
    %10 = tpu.assume_multiple %9, 32 : i32
    %11 = arith.index_cast %10 : i32 to index
    %c0 = arith.constant 0 : index
    %12 = vector.load %arg2[%11, %c0] : memref<32x128xf32, #tpu.memory_space<vmem>>, vector<32x128xf32>
    %13 = arith.index_cast %10 : i32 to index
    %c0_3 = arith.constant 0 : index
    %14 = vector.load %arg3[%13, %c0_3] : memref<32x128xf32, #tpu.memory_space<vmem>>, vector<32x128xf32>
    %15 = math.absf %12 : vector<32x128xf32>
    %cst_4 = arith.constant 0.000000e+00 : f32
    %16 = vector.broadcast %cst_4 : f32 to vector<32x128xf32>
    %17 = arith.subf %16, %15 : vector<32x128xf32>
    %18 = math.exp %17 : vector<32x128xf32>
    %cst_5 = arith.constant 0.000000e+00 : f32
    %19 = vector.broadcast %cst_5 : f32 to vector<32x128xf32>
    %20 = arith.minimumf %12, %19 : vector<32x128xf32>
    %21 = math.log1p %18 : vector<32x128xf32>
    %22 = arith.subf %20, %21 : vector<32x128xf32>
    %cst_6 = arith.constant 1.000000e+00 : f32
    %23 = vector.broadcast %cst_6 : f32 to vector<32x128xf32>
    %24 = arith.addf %23, %18 : vector<32x128xf32>
    %25 = tpu.reciprocal %24 {approx = true} : vector<32x128xf32> -> vector<32x128xf32>
    %cst_7 = arith.constant 0.000000e+00 : f32
    %26 = vector.broadcast %cst_7 : f32 to vector<32x128xf32>
    %27 = arith.cmpf oge, %12, %26 : vector<32x128xf32>
    %28 = arith.mulf %18, %25 : vector<32x128xf32>
    %29 = arith.select %27, %25, %28 : vector<32x128xi1>, vector<32x128xf32>
    %cst_8 = arith.constant 1.000000e+00 : f32
    %30 = vector.broadcast %cst_8 : f32 to vector<32x128xf32>
    %31 = arith.subf %30, %29 : vector<32x128xf32>
    %32 = arith.mulf %31, %31 : vector<32x128xf32>
    %33 = arith.mulf %29, %29 : vector<32x128xf32>
    %cst_9 = arith.constant 5.000000e-01 : f32
    %34 = vector.broadcast %cst_9 : f32 to vector<32x128xf32>
    %35 = arith.mulf %34, %33 : vector<32x128xf32>
    %cst_10 = arith.constant 1.000000e+00 : f32
    %36 = vector.broadcast %cst_10 : f32 to vector<32x128xf32>
    %37 = arith.subf %36, %14 : vector<32x128xf32>
    %38 = arith.mulf %35, %37 : vector<32x128xf32>
    %39 = arith.mulf %38, %12 : vector<32x128xf32>
    %cst_11 = arith.constant 5.000000e-01 : f32
    %40 = vector.broadcast %cst_11 : f32 to vector<32x128xf32>
    %41 = arith.mulf %40, %32 : vector<32x128xf32>
    %42 = arith.mulf %41, %14 : vector<32x128xf32>
    %43 = arith.addf %42, %38 : vector<32x128xf32>
    %44 = arith.mulf %43, %22 : vector<32x128xf32>
    %45 = arith.subf %39, %44 : vector<32x128xf32>
    %46 = arith.addi %5, %10 : i32
    %47 = vector.broadcast %46 : i32 to vector<32x128xi32>
    %48 = arith.addi %47, %6 : vector<32x128xi32>
    %c128_i32 = arith.constant 128 : i32
    %49 = vector.broadcast %c128_i32 : i32 to vector<32x128xi32>
    %50 = arith.muli %48, %49 : vector<32x128xi32>
    %51 = arith.addi %50, %7 : vector<32x128xi32>
    %c384_i32 = arith.constant 384 : i32
    %52 = vector.broadcast %c384_i32 : i32 to vector<32x128xi32>
    %53 = arith.cmpi slt, %51, %52 : vector<32x128xi32>
    %cst_12 = arith.constant 0.000000e+00 : f32
    %54 = vector.broadcast %cst_12 : f32 to vector<32x128xf32>
    %55 = arith.select %53, %45, %54 : vector<32x128xi1>, vector<32x128xf32>
    %56 = vector.shape_cast %55 : vector<32x128xf32> to vector<4x8x128xf32>
    %cst_13 = arith.constant dense<0.000000e+00> : vector<8x128xf32>
    %57 = vector.multi_reduction <add>, %56, %cst_13 [0] : vector<4x8x128xf32> to vector<8x128xf32>
    %58 = arith.addf %8, %57 : vector<8x128xf32>
    %c1_i32_14 = arith.constant 1 : i32
    %c0_15 = arith.constant 0 : index
    %c0_16 = arith.constant 0 : index
    %59 = vector.load %arg4[%c0_15, %c0_16] : memref<8x128xf32, #tpu.memory_space<vmem>>, vector<8x128xf32>
    %60 = arith.addf %59, %58 : vector<8x128xf32>
    %c0_17 = arith.constant 0 : index
    %c0_18 = arith.constant 0 : index
    %61 = vector.load %arg4[%c0_17, %c0_18] : memref<8x128xf32, #tpu.memory_space<vmem>>, vector<8x128xf32>
    tpu.vector_store %arg4[%c0_17, %c0_18], %60 {strides = array<i32>} : memref<8x128xf32, #tpu.memory_space<vmem>>, vector<8x128xf32>,
    return
  }
  func.func @transform_0(%arg0: i32, %arg1: i32) -> (i32, i32) {
    %c1_i32 = arith.constant 1 : i32
    %0 = arith.muli %arg0, %c1_i32 : i32
    %1 = arith.addi %0, %arg1 : i32
    %c0_i32 = arith.constant 0 : i32
    %2 = arith.minsi %1, %c0_i32 : i32
    %c0_i32_0 = arith.constant 0 : i32
    %c0_i32_1 = arith.constant 0 : i32
    return %2, %c0_i32_0 : i32, i32
  }
  func.func @transform_1(%arg0: i32, %arg1: i32) -> (i32, i32) {
    %c1_i32 = arith.constant 1 : i32
    %0 = arith.muli %arg0, %c1_i32 : i32
    %1 = arith.addi %0, %arg1 : i32
    %c0_i32 = arith.constant 0 : i32
    %2 = arith.minsi %1, %c0_i32 : i32
    %c0_i32_0 = arith.constant 0 : i32
    %c0_i32_1 = arith.constant 0 : i32
    return %2, %c0_i32_0 : i32, i32
  }
  func.func @transform_2(%arg0: i32, %arg1: i32) -> (i32, i32) {
    %c0_i32 = arith.constant 0 : i32
    %c0_i32_0 = arith.constant 0 : i32
    return %arg0, %c0_i32 : i32, i32
  }
}

</mosaic_0001>

<bundles_post_ra>
// kernel: focal_loss.1
= control target key start
LH: loop header
LB: loop body
LE: loop exit
PB: predicated region body
PF: predicated region fallthrough
CT: control target
= control target key end

     0   :  { %v102_v23 = vlaneseq  ;;  %s485_s0 = inlined_call_operand.vmem [shape: f32[3,128], index: 0, kind: input, shape index: {}]   ;;  %s486_s1 = inlined_call_operand.vmem [shape: f32[3,128], index: 1, kind: input, shape index: {}]   ;;  %s487_s2 = inlined_call_operand.vmem [shape: f32[8,128], index: 2, kind: output, shape index: {}]  }
   0x1   :  { %v333_v0 = vld [vmem:[%s485_s0] sm:$0xff]  ;;  %v338_v1 = vld [vmem:[%s485_s0 + $0x8] sm:$0xff]  ;;  %v343_v2 = vld [vmem:[%s485_s0 + $0x10] sm:$0xff] }
   0x2   :  { %v348_v3 = vld [vmem:[%s485_s0 + $0x18] sm:$0xff]  ;;  %v117_v4 = vand.u32 2147483647, %v333_v0  ;;  %v118_v5 = vand.u32 2147483647, %v338_v1  ;;  %v103_v25 = vshrl.u32 %v102_v23, 7 }
   0x3   :  { %v119_v6 = vand.u32 2147483647, %v343_v2  ;;  %v120_v7 = vand.u32 2147483647, %v348_v3  ;;  %v368_v29 = vand.u32 127, %v102_v23  ;;  %v133_v30 = vmin.f32 %v333_v0, 0.0 }
   0x4   :  { %v121_v8 = vsub.f32 0.0, %v117_v4  ;;  %v122_v9 = vsub.f32 0.0, %v118_v5  ;;  %v104_v28 = vadd.s32 8, %v103_v25  ;;  %v105_v32 = vadd.s32 16, %v103_v25  ;;  %v377_v34 = vld [vmem:[%s486_s1] sm:$0xff]  ;;  %v382_v35 = vld [vmem:[%s486_s1 + $0x8] sm:$0xff] }
   0x5   :  { %v123_v10 = vsub.f32 0.0, %v119_v6  ;;  %v124_v11 = vsub.f32 0.0, %v120_v7  ;;  %v372_v33 = vadd.s32 24, %v103_v25  ;;  %v134_v36 = vmin.f32 %v338_v1, 0.0  ;;  %v392_v42 = vld [vmem:[%s486_s1 + $0x10] sm:$0xff]  ;;  %v404_v50 = vld [vmem:[%s486_s1 + $0x18] sm:$0xff] }
   0x6   :  { %v125_v12 = vmul.f32 1.442695, %v121_v8  ;;  %v127_v13 = vmul.f32 1.442695, %v122_v9  ;;  %v135_v38 = vmin.f32 %v343_v2, 0.0  ;;  %v136_v39 = vmin.f32 %v348_v3, 0.0 }
   0x7   :  { %v129_v14 = vmul.f32 1.442695, %v123_v10  ;;  %v131_v15 = vmul.f32 1.442695, %v124_v11  ;;  %vm185_vm0 = vcmp.ge.f32.partialorder %v333_v0, 0.0  ;;  %vm186_vm1 = vcmp.ge.f32.partialorder %v338_v1, 0.0 }
   0x8   :  { %291 = vpow2.f32 %v125_v12  ;;  %vm187_vm2 = vcmp.ge.f32.partialorder %v343_v2, 0.0  ;;  %vm188_vm3 = vcmp.ge.f32.partialorder %v348_v3, 0.0  ;;  %v213_v47 = vsub.f32 1.0, %v377_v34 }
   0x9   :  { %293 = vpow2.f32 %v127_v13  ;;  %v214_v48 = vsub.f32 1.0, %v382_v35  ;;  %v251_v54 = vmul.u32 128, %v103_v25  ;;  %v215_v58 = vsub.f32 1.0, %v392_v42 }
   0xa   :  { %295 = vpow2.f32 %v129_v14  ;;  %v252_v59 = vmul.u32 128, %v104_v28  ;;  %v253_v63 = vmul.u32 128, %v105_v32  ;;  %v216_v8 = vsub.f32 1.0, %v404_v50 }
   0xb   :  { %297 = vpow2.f32 %v131_v15  ;;  %v254_v12 = vmul.u32 128, %v372_v33  ;;  %v429_v13 = vadd.s32 %v251_v54, %v368_v29 }
   0xd   :  { %vm259_vm8 = vcmp.lt.s32.totalorder %v429_v13, 384 }
  0x15   :  { %v354_v16 = vpop.eup %291 }
  0x16   :  { %v356_v17 = vpop.eup %293  ;;  %v137_v18 = vadd.f32 1.0, %v354_v16  ;;  %v140_v26 = vmul.f32 -0.5, %v354_v16  ;;  %v143_v40 = vand.u32 2147483647, %v354_v16 }
  0x17   :  { %v359_v19 = vpop.eup %295  ;;  %v146_v20 = vadd.f32 1.0, %v356_v17  ;;  %v149_v27 = vmul.f32 -0.5, %v356_v17  ;;  %v152_v45 = vand.u32 2147483647, %v356_v17 }
  0x18   :  { %v362_v21 = vpop.eup %297  ;;  %299 = vlog2.f32 %v137_v18  ;;  %v155_v22 = vadd.f32 1.0, %v359_v19  ;;  %v158_v31 = vmul.f32 -0.5, %v359_v19  ;;  %v141_v37 = vadd.f32 1.0, %v140_v26 }
  0x19   :  { %301 = vlog2.f32 %v146_v20  ;;  %v164_v24 = vadd.f32 1.0, %v362_v21  ;;  %v167_v41 = vmul.f32 -0.5, %v362_v21  ;;  %v150_v43 = vadd.f32 1.0, %v149_v27 }
  0x1a   :  { %303 = vlog2.f32 %v155_v22  ;;  %v159_v46 = vadd.f32 1.0, %v158_v31  ;;  %v142_v52 = vmul.f32 %v354_v16, %v141_v37  ;;  %v161_v53 = vand.u32 2147483647, %v359_v19 }
  0x1b   :  { %305 = vlog2.f32 %v164_v24  ;;  %vm408_vm4 = vcmp.lt.f32.partialorder %v143_v40, 0.0004427343  ;;  %v168_v57 = vadd.f32 1.0, %v167_v41  ;;  %v151_v61 = vmul.f32 %v356_v17, %v150_v43 }
  0x1c   :  { %307 = vrcp.f32 %v137_v18  ;;  %v170_v62 = vand.u32 2147483647, %v362_v21  ;;  %vm415_vm5 = vcmp.lt.f32.partialorder %v152_v45, 0.0004427343  ;;  %v160_v7 = vmul.f32 %v359_v19, %v159_v46 }
  0x1d   :  { %309 = vrcp.f32 %v146_v20  ;;  %vm423_vm6 = vcmp.lt.f32.partialorder %v161_v53, 0.0004427343  ;;  %v169_v18 = vmul.f32 %v362_v21, %v168_v57  ;;  %v444_v27 = vadd.s32 %v253_v63, %v368_v29 }
  0x1e   :  { %311 = vrcp.f32 %v155_v22  ;;  %v434_v22 = vadd.s32 %v252_v59, %v368_v29  ;;  %vm438_vm7 = vcmp.lt.f32.partialorder %v170_v62, 0.0004427343 }
  0x1f   :  { %313 = vrcp.f32 %v164_v24  ;;  %vm261_vm10 = vcmp.lt.s32.totalorder %v444_v27, 384 }
  0x20   :  { %vm260_vm9 = vcmp.lt.s32.totalorder %v434_v22, 384 }
  0x25   :  { %v300_v44 = vpop.eup %299 }
  0x26   :  { %v302_v49 = vpop.eup %301  ;;  %v139_v51 = vmul.f32 0.6931472, %v300_v44 }
  0x27   :  { %v304_v55 = vpop.eup %303  ;;  %v148_v60 = vmul.f32 0.6931472, %v302_v49 }
  0x28   :  { %v306_v4 = vpop.eup %305  ;;  %v157_v6 = vmul.f32 0.6931472, %v304_v55  ;;  %v145_v10 = vsel %vm408_vm4, %v142_v52, %v139_v51 }
  0x29   :  { %v308_v9 = vpop.eup %307  ;;  %v166_v15 = vmul.f32 0.6931472, %v306_v4  ;;  %v154_v24 = vsel %vm415_vm5, %v151_v61, %v148_v60  ;;  %v173_v31 = vsub.f32 %v133_v30, %v145_v10 }
  0x2a   :  { %v310_v14 = vpop.eup %309  ;;  %v189_v20 = vmul.f32 %v308_v9, %v354_v16  ;;  %v163_v16 = vsel %vm423_vm6, %v160_v7, %v157_v6 }
  0x2b   :  { %v312_v23 = vpop.eup %311  ;;  %v190_v26 = vmul.f32 %v310_v14, %v356_v17  ;;  %v172_v43 = vsel %vm438_vm7, %v169_v18, %v166_v15  ;;  %v175_v15 = vsub.f32 %v135_v38, %v163_v16 }
  0x2c   :  { %v314_v28 = vpop.eup %313  ;;  %v191_v32 = vmul.f32 %v312_v23, %v359_v19  ;;  %v193_v33 = vsel %vm185_vm0, %v308_v9, %v189_v20  ;;  %v174_v9 = vsub.f32 %v134_v36, %v154_v24  ;;  %v258_v24 = vadd.s32 %v254_v12, %v368_v29 }
  0x2d   :  { %v192_v37 = vmul.f32 %v314_v28, %v362_v21  ;;  %v194_v40 = vsel %vm186_vm1, %v310_v14, %v190_v26  ;;  %v197_v41 = vsub.f32 1.0, %v193_v33  ;;  %v205_v17 = vmul.f32 %v193_v33, %v193_v33 }
  0x2e   :  { %v195_v44 = vsel %vm187_vm2, %v312_v23, %v191_v32  ;;  %v198_v45 = vsub.f32 1.0, %v194_v40  ;;  %v206_v30 = vmul.f32 %v194_v40, %v194_v40  ;;  %vm262_vm11 = vcmp.lt.s32.totalorder %v258_v24, 384 }
  0x2f   :  { %v196_v19 = vsel %vm188_vm3, %v314_v28, %v192_v37  ;;  %v199_v46 = vsub.f32 1.0, %v195_v44  ;;  %v201_v49 = vmul.f32 %v197_v41, %v197_v41  ;;  %v207_v51 = vmul.f32 %v195_v44, %v195_v44 }
  0x30   :  { %v200_v21 = vsub.f32 1.0, %v196_v19  ;;  %v202_v52 = vmul.f32 %v198_v45, %v198_v45  ;;  %v208_v53 = vmul.f32 %v196_v19, %v196_v19  ;;  %v209_v54 = vmul.f32 0.5, %v205_v17 }
  0x31   :  { %v203_v55 = vmul.f32 %v199_v46, %v199_v46  ;;  %v210_v56 = vmul.f32 0.5, %v206_v30  ;;  %v211_v57 = vmul.f32 0.5, %v207_v51  ;;  %v225_v59 = vmul.f32 0.5, %v201_v49 }
  0x32   :  { %v204_v60 = vmul.f32 %v200_v21, %v200_v21  ;;  %v212_v61 = vmul.f32 0.5, %v208_v53  ;;  %v217_v62 = vmul.f32 %v213_v47, %v209_v54  ;;  %v226_v63 = vmul.f32 0.5, %v202_v52 }
  0x33   :  { %v218_v4 = vmul.f32 %v214_v48, %v210_v56  ;;  %v219_v5 = vmul.f32 %v215_v58, %v211_v57  ;;  %v227_v6 = vmul.f32 0.5, %v203_v55  ;;  %v229_v7 = vmul.f32 %v225_v59, %v377_v34 }
  0x34   :  { %v220_v10 = vmul.f32 %v216_v8, %v212_v61  ;;  %v228_v11 = vmul.f32 0.5, %v204_v60  ;;  %v230_v14 = vmul.f32 %v226_v63, %v382_v35  ;;  %v221_v47 = vmul.f32 %v217_v62, %v333_v0 }
  0x35   :  { %v231_v18 = vmul.f32 %v227_v6, %v392_v42  ;;  %v233_v20 = vadd.f32 %v229_v7, %v217_v62  ;;  %v176_v48 = vsub.f32 %v136_v39, %v172_v43  ;;  %v222_v34 = vmul.f32 %v218_v4, %v338_v1 }
  0x36   :  { %v232_v58 = vmul.f32 %v228_v11, %v404_v50  ;;  %v234_v36 = vadd.f32 %v230_v14, %v218_v4  ;;  %v223_v8 = vmul.f32 %v219_v5, %v343_v2  ;;  %v224_v38 = vmul.f32 %v220_v10, %v348_v3 }
  0x37   :  { %v235_v23 = vadd.f32 %v231_v18, %v219_v5  ;;  %v237_v35 = vmul.f32 %v233_v20, %v173_v31 }
  0x38   :  { %v236_v0 = vadd.f32 %v232_v58, %v220_v10  ;;  %v238_v25 = vmul.f32 %v234_v36, %v174_v9 }
  0x39   :  { %v239_v42 = vmul.f32 %v235_v23, %v175_v15  ;;  %v241_v26 = vsub.f32 %v221_v47, %v237_v35 }
  0x3a   :  { %v240_v1 = vmul.f32 %v236_v0, %v176_v48  ;;  %v242_v39 = vsub.f32 %v222_v34, %v238_v25 }
  0x3b   :  { %v243_v50 = vsub.f32 %v223_v8, %v239_v42  ;;  %v263_v2 = vsel %vm259_vm8, %v241_v26, 0.0 }
  0x3c   :  { %v244_v28 = vsub.f32 %v224_v38, %v240_v1  ;;  %v264_v16 = vsel %vm260_vm9, %v242_v39, 0.0 }
  0x3d   :  { %v265_v29 = vsel %vm261_vm10, %v243_v50, 0.0  ;;  %v267_v12 = vadd.f32 %v264_v16, %v263_v2 }
  0x3e   :  { %v266_v3 = vsel %vm262_vm11, %v244_v28, 0.0 }
  0x3f   :  { %v268_v31 = vadd.f32 %v267_v12, %v265_v29 }
  0x41   :  { %v269_v32 = vadd.f32 %v268_v31, %v266_v3 }
  0x43   :  { %273 = vst [vmem:[%s487_s2] sm:$0xff] %v269_v32 }

</bundles_post_ra>
